<compile_context>
chip_gen: v7x
topology: tpu7x:2x2x1
jax: 0.10.0
libtpu: 0.0.40
codegen_flags: <defaults>
</compile_context>

<pallas_src>
import jax
import jax.numpy as jnp
from jax.experimental import pallas as pl
from jax.experimental.pallas import tpu as pltpu


def _adv_kernel(x_ref, w_ref, b_ref, o_ref):
    # x_ref: (block_rows, W) VMEM    w_ref: (W, G) VMEM (resident)
    # b_ref: (1,) SMEM f32           o_ref: (block_rows, G) VMEM
    x = x_ref[...]                      # no upcast: MXU accumulates in f32
    w = w_ref[...]
    logits = jnp.dot(x, w, preferred_element_type=jnp.float32) + b_ref[0]
    # Numerically stable sigmoid; exp -> EUP, reciprocal -> EUP (approx) +
    # one Newton refinement so accuracy matches a full divide.
    z = jnp.exp(-jnp.abs(logits))
    den = 1.0 + z
    r = pl.reciprocal(den, approx=True)
    r = r * (2.0 - den * r)
    sig = jnp.where(logits >= 0, r, z * r)
    # TODO(synk): a lane-dense (1, block_rows*G) output slab (in-kernel
    # transpose on the idle XLU) would turn the remaining masked stores into
    # unmasked vst; output traffic is negligible vs x reads, so skipped.
    o_ref[...] = sig.astype(o_ref.dtype)


def _round_up(n, m):
    return -(-n // m) * m


def _choose_block_rows(rows, width, itemsize):
    """Pick the batch tile (in kernel rows of width `width`).

    Target ~2 MiB of lane-padded x per tile: big enough that the tile DMA
    (>~1 us on v6e-class HBM) dwarfs the ~0.35 us per-step overhead, small
    enough that double-buffered x + the lane-padded double-buffered output +
    the resident weight fit every generation's scoped-VMEM default
    (16 MiB v5e, 32 MiB v6e/v7x; v7x physical VMEM is only 64 MiB)."""
    lane_padded = _round_up(width, 128)
    bytes_per_row = lane_padded * itemsize
    target_bytes = 2 * 1024 * 1024
    blk = max(8, (target_bytes // bytes_per_row) // 8 * 8)
    # v7x megacore: keep >= 2 grid steps on the "parallel" axis when possible.
    half = _round_up(-(-rows // 2), 8)
    blk = min(blk, max(8, half))
    blk = min(blk, _round_up(rows, 8))
    return int(blk)


def little_adversarial_network(x, weight, bias, *, block_rows=None):
    """x: (B, F); weight: (1, F) (PyTorch nn.Linear layout); bias: (1,) or ().

    Returns sigmoid(x @ weight.T + bias), shape (B, 1).
    """
    B, F = x.shape
    w_row = jnp.asarray(weight).reshape(1, F).astype(x.dtype)
    bias1 = jnp.asarray(bias).reshape(1).astype(jnp.float32)   # scalar -> SMEM

    # Row packing for small feature dims (removes lane padding of the x tile).
    G = 128 // F if (F < 128 and 128 % F == 0) else 1
    if G > 1 and B % G == 0 and (B // G) >= 8:
        rows, width, n_out = B // G, G * F, G
        x_k = x.reshape(rows, width)            # contiguous reshape: no HBM copy
        # Block-diagonal weight: W[g*F + f, g] = w[f], zero elsewhere.
        w_k = (jnp.eye(G, dtype=x.dtype)[:, None, :]
               * w_row.reshape(1, F, 1)).reshape(width, n_out)
    else:
        # TODO(synk): if B % G != 0 one could pack the bulk and run the < G-row
        # tail separately instead of falling back to the unpacked layout
        # (padding x would copy the whole tensor through HBM, so we never pad).
        rows, width, n_out = B, F, 1
        x_k = x
        w_k = w_row.T                           # (F, 1); tiny and resident
        # TODO(synk): for very large F, add a K grid axis ("arbitrary") with an
        # f32 VMEM accumulator instead of shrinking block_rows (v7x: 64 MiB).

    if block_rows is None:
        block_rows = _choose_block_rows(rows, width, jnp.dtype(x.dtype).itemsize)
    block_rows = max(8, _round_up(int(block_rows), 8))

    grid = (pl.cdiv(rows, block_rows),)         # ragged edge block masked by Pallas
    out = pl.pallas_call(
        _adv_kernel,
        out_shape=jax.ShapeDtypeStruct((rows, n_out), x.dtype),
        grid_spec=pltpu.PrefetchScalarGridSpec(
            num_scalar_prefetch=0,
            grid=grid,
            in_specs=[
                pl.BlockSpec((block_rows, width), lambda i: (i, 0)),   # x, pipelined
                pl.BlockSpec((width, n_out), lambda i: (0, 0)),        # weight, resident
                pl.BlockSpec(memory_space=pltpu.MemorySpace.SMEM),     # bias scalar
            ],
            out_specs=pl.BlockSpec((block_rows, n_out), lambda i: (i, 0)),
        ),
        compiler_params=pltpu.CompilerParams(
            dimension_semantics=("parallel",)),
    )(x_k, w_k, bias1)
    return out.reshape(B, 1)


def little_adversarial_network_ref(x, weight, bias):
    return jax.nn.sigmoid(x @ weight.T + bias)


if __name__ == "__main__":
    key = jax.random.PRNGKey(0)
    k_w, k1, k2, k3, k4 = jax.random.split(key, 5)
    fwd = jax.jit(little_adversarial_network)

    # 1) module-default shapes: batch=8, in_feature=32.
    #    Params mirror the PyTorch __init__: weight ~ N(0, 0.01), bias = 0.
    B1, F1 = 8, 32
    w1 = (0.01 * jax.random.normal(k_w, (1, F1))).astype(jnp.float32)
    b1 = jnp.zeros((1,), jnp.float32)
    x1 = jax.random.normal(k1, (B1, F1), jnp.float32)
    o1 = jax.block_until_ready(fwd(x1, w1, b1))
    assert o1.shape == (B1, 1)
    assert jnp.allclose(o1, little_adversarial_network_ref(x1, w1, b1),
                        atol=1e-4, rtol=1e-4)

    # 2) ragged multi-step grid, packed path (F=64 -> G=2), no pre-pad of x.
    B2, F2 = 1000, 64
    w2 = (0.01 * jax.random.normal(k_w, (1, F2))).astype(jnp.float32)
    b2 = jnp.full((1,), 0.1, jnp.float32)
    x2 = jax.random.normal(k2, (B2, F2), jnp.float32)
    o2 = jax.block_until_ready(fwd(x2, w2, b2))
    assert o2.shape == (B2, 1)
    assert jnp.allclose(o2, little_adversarial_network_ref(x2, w2, b2),
                        atol=1e-4, rtol=1e-4)

    # 3) unpacked path (F >= 128), two grid steps.
    B3, F3 = 64, 256
    w3 = (0.01 * jax.random.normal(k_w, (1, F3))).astype(jnp.float32)
    b3 = jnp.full((1,), -0.05, jnp.float32)
    x3 = jax.random.normal(k3, (B3, F3), jnp.float32)
    o3 = jax.block_until_ready(fwd(x3, w3, b3))
    assert o3.shape == (B3, 1)
    assert jnp.allclose(o3, little_adversarial_network_ref(x3, w3, b3),
                        atol=1e-4, rtol=1e-4)

    # 4) bf16 inputs go straight to the MXU (no full-tile upcast), ragged edge.
    B4, F4 = 300, 32
    w4 = (0.01 * jax.random.normal(k_w, (1, F4))).astype(jnp.bfloat16)
    b4 = jnp.zeros((1,), jnp.float32)
    x4 = jax.random.normal(k4, (B4, F4), jnp.float32).astype(jnp.bfloat16)
    o4 = jax.block_until_ready(fwd(x4, w4, b4))
    ref4 = little_adversarial_network_ref(x4.astype(jnp.float32),
                                          w4.astype(jnp.float32), b4)
    assert o4.shape == (B4, 1)
    assert jnp.allclose(o4.astype(jnp.float32), ref4, atol=1e-2, rtol=1e-2)

    print("KERNEL_OK")
</pallas_src>

<mosaic_0001>
module attributes {stable_mosaic.version = 11 : i64} {
  func.func @_adv_kernel(%arg0: i32, %arg1: memref<8x32xf32, #tpu.memory_space<vmem>>, %arg2: memref<32x1xf32, #tpu.memory_space<vmem>>, %arg3: memref<1xf32, #tpu.memory_space<smem>>, %arg4: memref<8x1xf32, #tpu.memory_space<vmem>>) attributes {dimension_semantics = [#tpu.dimension_semantics<parallel>], iteration_bounds = array<i64: 1>, scalar_prefetch = 0 : i64, scratch_operands = 0 : i64, tpu.core_type = #tpu.core_type<tc>, window_params = [{transform_indices = @transform_0, window_bounds = array<i64: 8, 32>}, {pipeline_mode = #tpu.pipeline_mode<synchronous>, transform_indices = @transform_1, window_bounds = array<i64: 32, 1>}, {transform_indices = @transform_2, window_bounds = array<i64: 1>}, {transform_indices = @transform_3, window_bounds = array<i64: 8, 1>}]} {
    %c0 = arith.constant 0 : index
    %c0_0 = arith.constant 0 : index
    %0 = vector.load %arg1[%c0, %c0_0] : memref<8x32xf32, #tpu.memory_space<vmem>>, vector<8x32xf32>
    %c0_1 = arith.constant 0 : index
    %c0_2 = arith.constant 0 : index
    %1 = vector.load %arg2[%c0_1, %c0_2] : memref<32x1xf32, #tpu.memory_space<vmem>>, vector<32x1xf32>
    %cst = arith.constant dense<0.000000e+00> : vector<8x1xf32>
    %2 = tpu.matmul %0, %1, %cst {dimension_numbers = #tpu.dot_dimension_numbers<[1], [0], [0], [1], [0, 0, 1, 1], [], []>} : vector<8x32xf32>, vector<32x1xf32>, vector<8x1xf32> -> vector<8x1xf32>
    %c0_3 = arith.constant 0 : index
    %3 = memref.load %arg3[%c0_3] : memref<1xf32, #tpu.memory_space<smem>>
    %4 = vector.broadcast %3 : f32 to vector<8x1xf32>
    %5 = arith.addf %2, %4 : vector<8x1xf32>
    %6 = math.absf %5 : vector<8x1xf32>
    %cst_4 = arith.constant 0.000000e+00 : f32
    %7 = vector.broadcast %cst_4 : f32 to vector<8x1xf32>
    %8 = arith.subf %7, %6 : vector<8x1xf32>
    %9 = math.exp %8 : vector<8x1xf32>
    %cst_5 = arith.constant 1.000000e+00 : f32
    %10 = vector.broadcast %cst_5 : f32 to vector<8x1xf32>
    %11 = arith.addf %10, %9 : vector<8x1xf32>
    %12 = tpu.reciprocal %11 {approx = true} : vector<8x1xf32> -> vector<8x1xf32>
    %13 = arith.mulf %11, %12 : vector<8x1xf32>
    %cst_6 = arith.constant 2.000000e+00 : f32
    %14 = vector.broadcast %cst_6 : f32 to vector<8x1xf32>
    %15 = arith.subf %14, %13 : vector<8x1xf32>
    %16 = arith.mulf %12, %15 : vector<8x1xf32>
    %cst_7 = arith.constant 0.000000e+00 : f32
    %17 = vector.broadcast %cst_7 : f32 to vector<8x1xf32>
    %18 = arith.cmpf oge, %5, %17 : vector<8x1xf32>
    %19 = arith.mulf %9, %16 : vector<8x1xf32>
    %20 = arith.select %18, %16, %19 : vector<8x1xi1>, vector<8x1xf32>
    %c0_8 = arith.constant 0 : index
    %c0_9 = arith.constant 0 : index
    %21 = vector.load %arg4[%c0_8, %c0_9] : memref<8x1xf32, #tpu.memory_space<vmem>>, vector<8x1xf32>
    tpu.vector_store %arg4[%c0_8, %c0_9], %20 {strides = array<i32>} : memref<8x1xf32, #tpu.memory_space<vmem>>, vector<8x1xf32>,
    return
  }
  func.func @transform_0(%arg0: i32) -> (i32, i32) {
    %c0_i32 = arith.constant 0 : i32
    %c0_i32_0 = arith.constant 0 : i32
    return %arg0, %c0_i32 : i32, i32
  }
  func.func @transform_1(%arg0: i32) -> (i32, i32) {
    %c0_i32 = arith.constant 0 : i32
    %c0_i32_0 = arith.constant 0 : i32
    %c0_i32_1 = arith.constant 0 : i32
    return %c0_i32, %c0_i32_0 : i32, i32
  }
  func.func @transform_2(%arg0: i32) -> i32 {
    %c0_i32 = arith.constant 0 : i32
    %c0_i32_0 = arith.constant 0 : i32
    return %c0_i32 : i32
  }
  func.func @transform_3(%arg0: i32) -> (i32, i32) {
    %c0_i32 = arith.constant 0 : i32
    %c0_i32_0 = arith.constant 0 : i32
    return %arg0, %c0_i32 : i32, i32
  }
}

</mosaic_0001>

<bundles_post_ra>
// kernel: little_adversarial_network.1
= control target key start
LH: loop header
LB: loop body
LE: loop exit
PB: predicated region body
PF: predicated region fallthrough
CT: control target
= control target key end

     0   :  { %v144_v0 = vmov 0.0|0.0   ;;  %vm145_vm0 = vmmov 0   ;;  %v146_v4 = vmov 0.0   ;;  %vm22_vm1 = vcmask 261120   ;;  %s188_s1 = inlined_call_operand.vmem [shape: f32[32,1], index: 1, kind: input, shape index: {}]   ;;  %s189_s0 = inlined_call_operand.vmem [shape: f32[8,32], index: 0, kind: input, shape index: {}]   ;;  %s190_s2 = inlined_call_operand.<no memory space> [shape: f32[1], index: 2, kind: input, shape index: {}]   ;;  %s191_s3 = inlined_call_operand.vmem [shape: f32[8,1], index: 3, kind: output, shape index: {}]  }
   0x1   :  { %131 = vmatprep.subr.bf16.mxu0 %v144_v0  ;;  %v16_v1 = vld [vmem:[%s188_s1] sm:$0xff]  ;;  %v17_v2 = vld [vmem:[%s188_s1 + $0x8] sm:$0xff]  ;;  %v18_v3 = vld [vmem:[%s188_s1 + $0x10] sm:$0xff]  ;;  %128 = vmatprep.mubr.msk.f32.mxu0 %vm145_vm0, %v146_v4  ;;  %v21_v9 = vstv %s190_s2  ;;  %vm108_vm2 = vcmask 7168  }
   0x2   :  { %v132_v5 = vpack.c.bf16 %v17_v2, %v16_v1  ;;  %v19_v6 = vld [vmem:[%s188_s1 + $0x18] sm:$0xff]  ;;  %v15_v8 = vld [vmem:[%s189_s0] sm:$0xff] }
   0x3   :  { %v135_v7 = vpack.c.bf16 %v19_v6, %v18_v3 }
   0x4   :  { %133 = vmatpush3.bf16.msra.mxu0 %v132_v5 }
   0x5   :  { %134 = vmatprep.subr.bf16.mxu0 %v144_v0 }
   0x8   :  { %136 = vmatpush3.bf16.msra.mxu0 %v135_v7 }
   0xb   :  { %129 = vmatmul.mubr.msk.f32.vlgmr.msra.gmra.mrb[0].mxu0 %vm22_vm1, %v15_v8 }
  0xde   :  { %v92_v10 = vpop.f32.mrb[0].mxu0 }
  0xdf   :  { %v93_v11 = vadd.f32 %v92_v10, %v21_v9  ;;  %v130_v12 = vpop.f32.mrb[1].mxu0 }
  0xe1   :  { %v96_v13 = vand.u32 2147483647, %v93_v11  ;;  %vm105_vm3 = vcmp.ge.f32.partialorder %v93_v11, 0.0 }
  0xe3   :  { %v97_v14 = vsub.f32 0.0, %v96_v13 }
  0xe5   :  { %v98_v15 = vmul.f32 1.442695, %v97_v14 }
  0xe7   :  { %140 = vpow2.f32 %v98_v15 }
  0xf1   :  { %v141_v16 = vpop.eup %140 }
  0xf2   :  { %v100_v17 = vadd.f32 1.0, %v141_v16 }
  0xf4   :  { %142 = vrcp.f32 %v100_v17 }
  0xfe   :  { %v143_v18 = vpop.eup %142 }
  0xff   :  { %v102_v19 = vmul.f32 %v143_v18, %v100_v17 }
 0x101   :  { %v103_v20 = vsub.f32 2.0, %v102_v19 }
 0x103   :  { %v104_v21 = vmul.f32 %v143_v18, %v103_v20 }
 0x105   :  { %v106_v22 = vmul.f32 %v141_v16, %v104_v21 }
 0x107   :  { %v107_v23 = vsel %vm105_vm3, %v104_v21, %v106_v22 }
 0x108   :  { %109 = vst.msk [vmem:[%s191_s3] sm:$0xff] %vm108_vm2, %v107_v23 }

</bundles_post_ra>
